<compile_context>
chip_gen: v7x
topology: tpu7x:2x2x1
jax: 0.10.0
libtpu: 0.0.40
codegen_flags: <defaults>
</compile_context>

<pallas_src>
import math
from functools import partial

import jax
import jax.numpy as jnp
from jax import lax
from jax.experimental import pallas as pl
from jax.experimental.pallas import tpu as pltpu

LN_EPS = 1e-5


# ----------------------------------------------------------------- helpers --

def _layernorm(x, w, b):
    # f32 math (v5e VPU/EUP have no bf16).
    mu = jnp.mean(x, axis=-1, keepdims=True)
    var = jnp.mean((x - mu) ** 2, axis=-1, keepdims=True)
    return (x - mu) * lax.rsqrt(var + LN_EPS) * w + b


# ---------------------------------------------------------------- l1 kernel --

def _l1_kernel(zc_ref, wt_ref, b_ref, o_ref):
    o_ref[...] = (
        jnp.dot(zc_ref[...], wt_ref[...], preferred_element_type=jnp.float32)
        + b_ref[...]
    )


def l1_pallas(zc, wt, b):
    B, _ = zc.shape
    Dout = wt.shape[1]
    vmem = pl.BlockSpec(memory_space=pltpu.MemorySpace.VMEM)
    return pl.pallas_call(
        _l1_kernel,
        out_shape=jax.ShapeDtypeStruct((B, Dout), jnp.float32),
        in_specs=[vmem, vmem, vmem],
        out_specs=vmem,
    )(zc, wt, b)


# -------------------------- fused encoder stack + conv1x1 (single launch) ---

def _stack_kernel(x_ref,
                  ln1w_ref, ln1b_ref,
                  wqt_ref, wkt_ref, wvt_ref, bq_ref, bk_ref, bv_ref,
                  wot_ref, bo_ref,
                  ln2w_ref, ln2b_ref,
                  w1t_ref, b1_ref, w2t_ref, b2_ref,
                  cw_ref, cb_ref,
                  o_ref, *, num_heads, batch, ffn_chunk):
    x = x_ref[...]                          # (B*T, E) f32, rows = b*T + t
    BT, E = x.shape
    B = batch
    T = BT // B
    H = num_heads
    dh = E // H
    L = w1t_ref.shape[0]
    F = w1t_ref.shape[-1]
    n_chunks = F // ffn_chunk
    scale = 1.0 / math.sqrt(dh)

    for l in range(L):                      # layers resident; x carried as value
        # ---- pre-norm multi-head self-attention -----------------------------
        xn = _layernorm(x, ln1w_ref[l], ln1b_ref[l])
        xnb = xn.astype(jnp.bfloat16)       # bf16 operands, f32 accumulation
        q = jnp.dot(xnb, wqt_ref[l], preferred_element_type=jnp.float32) + bq_ref[l]
        k = jnp.dot(xnb, wkt_ref[l], preferred_element_type=jnp.float32) + bk_ref[l]
        v = jnp.dot(xnb, wvt_ref[l], preferred_element_type=jnp.float32) + bv_ref[l]
        q3 = q.reshape(B, T, E)
        k3 = k.reshape(B, T, E)
        v3 = v.reshape(B, T, E)

        # Per-head context folded straight into the out-projection:
        #   sum_h ctx_h @ Wo[h]  ==  concat_h(ctx_h) @ Wo
        # -> no masked width-dh scratch stores, no lane-concat relayouts.
        attn_acc = jnp.zeros((BT, E), jnp.float32)
        for h in range(H):
            sl = slice(h * dh, (h + 1) * dh)
            s = jnp.einsum('bqd,bkd->bqk', q3[:, :, sl], k3[:, :, sl],
                           preferred_element_type=jnp.float32) * scale
            s = s - jnp.max(s, axis=-1, keepdims=True)          # f32 softmax
            p = jnp.exp(s)
            p = p * pl.reciprocal(jnp.sum(p, axis=-1, keepdims=True), approx=True)
            ctx_h = jnp.einsum('bqk,bkd->bqd', p, v3[:, :, sl],
                               preferred_element_type=jnp.float32)   # (B,T,dh)
            attn_acc = attn_acc + jnp.dot(
                ctx_h.reshape(BT, dh).astype(jnp.bfloat16), wot_ref[l, h],
                preferred_element_type=jnp.float32)
        x = x + attn_acc + bo_ref[l]        # dropout1 -> identity

        # ---- pre-norm feed-forward, hidden dim chunked over F ---------------
        xn2 = _layernorm(x, ln2w_ref[l], ln2b_ref[l])
        xn2b = xn2.astype(jnp.bfloat16)

        def ffn_body(ci, acc, _l=l, _xn2b=xn2b):
            c0 = pl.multiple_of(ci * ffn_chunk, ffn_chunk)
            w1c = w1t_ref[_l, :, pl.ds(c0, ffn_chunk)]          # (E, FC) bf16
            b1c = b1_ref[_l, :, pl.ds(c0, ffn_chunk)]           # (1, FC) f32
            h1 = jnp.dot(_xn2b, w1c, preferred_element_type=jnp.float32) + b1c
            h1 = jax.nn.gelu(h1, approximate=False)             # exact erf, f32
            w2c = w2t_ref[_l, pl.ds(c0, ffn_chunk), :]          # (FC, E) bf16
            return acc + jnp.dot(h1.astype(jnp.bfloat16), w2c,
                                 preferred_element_type=jnp.float32)

        ff = lax.fori_loop(0, n_chunks, ffn_body,
                           jnp.zeros((BT, E), jnp.float32))
        x = x + ff + b2_ref[l]              # dropout2 -> identity

    # ---- final Conv1d(kernel=1): contract on E using the live x value -------
    y = lax.dot_general(cw_ref[...], x, (((1,), (1,)), ((), ())),
                        preferred_element_type=jnp.float32)
    o_ref[...] = y + cb_ref[...]            # (C, B*T)


def encoder_stack_conv_pallas(x_flat, p, *, num_heads, batch, ffn_chunk=512):
    BT, E = x_flat.shape
    F = p["w1_t"].shape[-1]
    C = p["conv_w"].shape[0]
    assert F % ffn_chunk == 0 and E % num_heads == 0 and BT % batch == 0

    args = (x_flat,
            p["ln1_w"], p["ln1_b"],
            p["wq_t"], p["wk_t"], p["wv_t"], p["bq"], p["bk"], p["bv"],
            p["wo_t"], p["bo"],
            p["ln2_w"], p["ln2_b"],
            p["w1_t"], p["b1"], p["w2_t"], p["b2"],
            p["conv_w"], p["conv_b"])
    vmem = pl.BlockSpec(memory_space=pltpu.MemorySpace.VMEM)

    return pl.pallas_call(
        partial(_stack_kernel, num_heads=num_heads, batch=batch,
                ffn_chunk=ffn_chunk),
        out_shape=jax.ShapeDtypeStruct((C, BT), jnp.float32),
        in_specs=[vmem] * len(args),
        out_specs=vmem,
        compiler_params=pltpu.CompilerParams(
            vmem_limit_bytes=16 * 1024 * 1024),
    )(*args)


# ------------------------------------------------------- params & forward ---

def init_params(key, *, latent_dim, class_embed_dim, n_classes, seq_len,
                data_embed_dim, seq_channels, n_layers, num_heads, dim_ff):
    E, F, L, C, H = data_embed_dim, dim_ff, n_layers, seq_channels, num_heads
    dh = E // H
    ks = jax.random.split(key, 17)

    def nrm(k, shape, s=0.05):
        return (s * jax.random.normal(k, shape)).astype(jnp.float32)

    def nrm_bf16(k, shape, s=0.05):
        return nrm(k, shape, s).astype(jnp.bfloat16)     # bf16 MXU operands

    return {
        "class_emb": nrm(ks[0], (n_classes, class_embed_dim), 1.0),
        # nn.Linear weight stored pre-transposed: (in, out)
        "l1_wt": nrm(ks[1], (latent_dim + class_embed_dim, seq_len * E)),
        "l1_b": nrm(ks[2], (1, seq_len * E)),
        # per-layer stacks (leading dim = layer), pre-transposed, bf16 weights
        "ln1_w": jnp.ones((L, 1, E), jnp.float32),
        "ln1_b": jnp.zeros((L, 1, E), jnp.float32),
        "wq_t": nrm_bf16(ks[3], (L, E, E)),
        "wk_t": nrm_bf16(ks[4], (L, E, E)),
        "wv_t": nrm_bf16(ks[5], (L, E, E)),
        "bq": nrm(ks[6], (L, 1, E)),
        "bk": nrm(ks[7], (L, 1, E)),
        "bv": nrm(ks[8], (L, 1, E)),
        # out-proj stored per-head: (L, H, dh, E)
        "wo_t": nrm_bf16(ks[9], (L, H, dh, E)),
        "bo": nrm(ks[10], (L, 1, E)),
        "ln2_w": jnp.ones((L, 1, E), jnp.float32),
        "ln2_b": jnp.zeros((L, 1, E), jnp.float32),
        "w1_t": nrm_bf16(ks[11], (L, E, F)),
        "b1": nrm(ks[12], (L, 1, F)),
        "w2_t": nrm_bf16(ks[13], (L, F, E)),
        "b2": nrm(ks[14], (L, 1, E)),
        # Conv1d(E -> C, kernel=1): weight (C, E, 1) squeezed -> (C, E), f32
        "conv_w": nrm(ks[15], (C, E)),
        "conv_b": nrm(ks[16], (C, 1)),
    }


def tts_gan_generator_forward(params, z, labels, *, seq_len, data_embed_dim,
                              num_heads):
    B = z.shape[0]
    E = data_embed_dim
    assert E % num_heads == 0
    # nn.Embedding lookup + concat: plain JAX glue (pure gather + concat).
    c = params["class_emb"][labels]                         # (B, class_embed)
    zc = jnp.concatenate([z, c], axis=1)                    # (B, latent+class)
    x = l1_pallas(zc, params["l1_wt"], params["l1_b"])      # (B, T*E)
    # Wrapper-side re-layout (lane->sublane reshape is not done in-kernel).
    x = x.reshape(B * seq_len, E)                           # (B*T, E)
    # pos_encodings=False (module default) -> PositionalEncoding not applied.
    y = encoder_stack_conv_pallas(x, params, num_heads=num_heads, batch=B)
    C = y.shape[0]                                          # y: (C, B*T)
    return y.reshape(C, B, seq_len).transpose(1, 0, 2)      # (B, C, T) NCW


# ------------------------------------------------------------------ driver ---

if __name__ == "__main__":
    # Small, module-consistent configuration.
    LATENT = 32
    CLASS_EMB = 16
    N_CLASSES = 4
    SEQ_LEN = 16          # seq_length
    EMB = 16              # data_embed_dim
    HEADS = 4             # num_heads (EMB % HEADS == 0)
    LAYERS = 2            # n_layers
    CHANNELS = 3          # seq_channels
    DIM_FF = 2048         # hardcoded in the PyTorch module
    B = 2

    root = jax.random.PRNGKey(0)
    kp, kz, kl = jax.random.split(root, 3)
    params = init_params(
        kp, latent_dim=LATENT, class_embed_dim=CLASS_EMB, n_classes=N_CLASSES,
        seq_len=SEQ_LEN, data_embed_dim=EMB, seq_channels=CHANNELS,
        n_layers=LAYERS, num_heads=HEADS, dim_ff=DIM_FF)

    z = jax.random.normal(kz, (B, LATENT), jnp.float32)
    labels = jax.random.randint(kl, (B,), 0, N_CLASSES)

    out = tts_gan_generator_forward(
        params, z, labels, seq_len=SEQ_LEN, data_embed_dim=EMB,
        num_heads=HEADS)
    out = jax.block_until_ready(out)

    assert out.shape == (B, CHANNELS, SEQ_LEN), out.shape
    assert bool(jnp.all(jnp.isfinite(out)))
    print("KERNEL_OK")
</pallas_src>

<mosaic_0001>
module attributes {stable_mosaic.version = 11 : i64} {
  func.func @_l1_kernel(%arg0: memref<2x48xf32, #tpu.memory_space<vmem>>, %arg1: memref<48x256xf32, #tpu.memory_space<vmem>>, %arg2: memref<1x256xf32, #tpu.memory_space<vmem>>, %arg3: memref<2x256xf32, #tpu.memory_space<vmem>>) attributes {dimension_semantics = [], scalar_prefetch = 0 : i64, scratch_operands = 0 : i64, tpu.core_type = #tpu.core_type<tc>} {
    %c0 = arith.constant 0 : index
    %c0_0 = arith.constant 0 : index
    %0 = vector.load %arg0[%c0, %c0_0] : memref<2x48xf32, #tpu.memory_space<vmem>>, vector<2x48xf32>
    %c0_1 = arith.constant 0 : index
    %c0_2 = arith.constant 0 : index
    %1 = vector.load %arg1[%c0_1, %c0_2] : memref<48x256xf32, #tpu.memory_space<vmem>>, vector<48x256xf32>
    %cst = arith.constant dense<0.000000e+00> : vector<2x256xf32>
    %2 = tpu.matmul %0, %1, %cst {dimension_numbers = #tpu.dot_dimension_numbers<[1], [0], [0], [1], [0, 0, 1, 1], [], []>} : vector<2x48xf32>, vector<48x256xf32>, vector<2x256xf32> -> vector<2x256xf32>
    %c0_3 = arith.constant 0 : index
    %c0_4 = arith.constant 0 : index
    %3 = vector.load %arg2[%c0_3, %c0_4] : memref<1x256xf32, #tpu.memory_space<vmem>>, vector<1x256xf32>
    %4 = vector.broadcast %3 : vector<1x256xf32> to vector<2x256xf32>
    %5 = arith.addf %2, %4 : vector<2x256xf32>
    %c0_5 = arith.constant 0 : index
    %c0_6 = arith.constant 0 : index
    %6 = vector.load %arg3[%c0_5, %c0_6] : memref<2x256xf32, #tpu.memory_space<vmem>>, vector<2x256xf32>
    tpu.vector_store %arg3[%c0_5, %c0_6], %5 {strides = array<i32>} : memref<2x256xf32, #tpu.memory_space<vmem>>, vector<2x256xf32>,
    return
  }
}

</mosaic_0001>

<bundles_post_ra>
// kernel: tpu_custom_call.1
= control target key start
LH: loop header
LB: loop body
LE: loop exit
PB: predicated region body
PF: predicated region fallthrough
CT: control target
= control target key end

     0   :  { %8 = vsyncpa [#allocation3], 0  ;;  %s333_s0 = inlined_call_operand.hbm [shape: f32[2,48], index: 0, kind: input, shape index: {}]   ;;  %s334_s1 = inlined_call_operand.hbm [shape: f32[48,256], index: 1, kind: input, shape index: {}]   ;;  %s335_s2 = inlined_call_operand.vmem [shape: f32[1,256], index: 2, kind: input, shape index: {}]   ;;  %s336_s3 = inlined_call_operand.hbm [shape: f32[2,256], index: 3, kind: output, shape index: {}]  }
   0x1   :  { %9 = vsyncpa [#allocation6], 0 }
   0x2   :  { %10 = vsyncpa [#allocation4], 0  ;;  %s261_s12 = smov [#allocation2]   ;;  %s262_s14 = smov [#allocation5]  }
   0x3   :  { %s17_s13 = sshll.u32 %s261_s12, 4  ;;  %s26_s15 = sshll.u32 %s262_s14, 4  ;;  %s18_s13 = int_to_ptr.vmem [resolvable:$true] %s17_s13  ;;  %s287_s15 = int_to_ptr.vmem [resolvable:$true] %s26_s15 }
   0x4   :  { %s189_s18 = scalar_lea.hbm %s333_s0, 32 }
   0x5   :  { %p190_p0 = scmp.ne.s32.totalorder %s333_s0, %s189_s18  ;;  %p193_p1 = scmp.lt.u32.totalorder %s189_s18, %s333_s0 }
   0x7   :  { %p195_p2 = pnand %p193_p1, %p190_p0 }
   0x9   :  { %198 = shalt.err (!%p195_p2)
}
   0xa   :  { %s199_s23 = scalar_lea.vmem %s18_s13, 32  ;;  %p204_p4 = scmp.lt.s32.totalorder %s18_s13, %s18_s13 }
   0xb   :  { %p200_p3 = scmp.ne.s32.totalorder %s18_s13, %s199_s23  ;;  %p205_p5 = scmp.lt.s32.totalorder %s199_s23, %s199_s23 }
   0xd   :  { %p206_p6 = por %p205_p5, %p204_p4 }
   0xf   :  { %p207_p7 = pnand %p206_p6, %p200_p3 }
  0x11   :  { %210 = shalt.err (!%p207_p7)
}
  0x12   :  { %20 = dma.hbm_to_vmem [thread:$0]  %s333_s0, 32, %s18_s13, [#allocation3]  }
  0x13   :  { %s211_s28 = scalar_lea.hbm %s334_s1, 1536 }
  0x14   :  { %p212_p8 = scmp.ne.s32.totalorder %s334_s1, %s211_s28  ;;  %p215_p9 = scmp.lt.u32.totalorder %s211_s28, %s334_s1 }
  0x16   :  { %p217_p10 = pnand %p215_p9, %p212_p8 }
  0x18   :  { %220 = shalt.err (!%p217_p10)
}
  0x19   :  { %s221_s6 = scalar_lea.vmem %s287_s15, 1536  ;;  %p226_p12 = scmp.lt.s32.totalorder %s287_s15, %s287_s15 }
  0x1a   :  { %p222_p11 = scmp.ne.s32.totalorder %s287_s15, %s221_s6  ;;  %p227_p13 = scmp.lt.s32.totalorder %s221_s6, %s221_s6 }
  0x1c   :  { %p228_p0 = por %p227_p13, %p226_p12 }
  0x1e   :  { %p229_p1 = pnand %p228_p0, %p222_p11 }
  0x20   :  { %232 = shalt.err (!%p229_p1)
}
  0x21   :  { %s263_s0 = smov 256   ;;  %s264_s7 = smov 16  }
  0x22   :  { %32 = dma.hbm_to_vmem [thread:$0]  %s334_s1, 1536, %s287_s15, [#allocation6], %s263_s0, %s263_s0, %s264_s7  }
  0x23   :  { %255 = dma.done.wait [#allocation3], 32  }
  0x24   :  { %256 = vsyncadd [#allocation3], 4294967264 }
  0x25   :  { %257 = dma.done.wait [#allocation6], 1536  }
  0x26   :  { %258 = vsyncadd [#allocation6], 4294965760  ;;  %v265_v0 = vmov 0.0   ;;  %v43_v1 = vld [vmem:[#allocation5 + $0x8] sm:$0xff]  ;;  %v45_v2 = vld [vmem:[#allocation5 + $0x18] sm:$0xff]  ;;  %vm66_vm0 = vcmask 392192   ;;  %v56_v20 = vlaneseq }
  0x27   :  { %134 = vmatprep.mubr.f32.mxu0 %v265_v0  ;;  %v42_v3 = vld [vmem:[#allocation5] sm:$0xff]  ;;  %v171_v4 = vpack.c.bf16 %v45_v2, %v43_v1  ;;  %v44_v5 = vld [vmem:[#allocation5 + $0x10] sm:$0xff]  ;;  %v47_v6 = vld [vmem:[#allocation5 + $0x28] sm:$0xff]  ;;  %s266_s11 = smov [#allocation7]  }
  0x28   :  { %v49_v7 = vld [vmem:[#allocation5 + $0x38] sm:$0xff]  ;;  %v173_v8 = vpack.c.bf16 %v44_v5, %v42_v3  ;;  %v46_v10 = vld [vmem:[#allocation5 + $0x20] sm:$0xff]  ;;  %v48_v11 = vld [vmem:[#allocation5 + $0x30] sm:$0xff]  ;;  %v57_v21 = vshrl.u32 %v56_v20, 7  ;;  %s159_s12 = sshll.u32 %s266_s11, 4  ;;  %s160_s12 = int_to_ptr.vmem [resolvable:$true] %s159_s12 }
  0x29   :  { %v175_v9 = vpack.c.bf16 %v49_v7, %v47_v6  ;;  %v51_v12 = vld [vmem:[#allocation5 + $0x48] sm:$0xff]  ;;  %172 = vmatprep.subr.bf16.mxu0 %v171_v4  ;;  %v53_v13 = vld [vmem:[#allocation5 + $0x58] sm:$0xff]  ;;  %v177_v14 = vpack.c.bf16 %v48_v11, %v46_v10  ;;  %v50_v16 = vld [vmem:[#allocation5 + $0x40] sm:$0xff]  ;;  %s233_s13 = scalar_lea.vmem %s160_s12, 64  ;;  %p238_p3 = scmp.lt.s32.totalorder %s160_s12, %s160_s12 }
  0x2a   :  { %174 = vmatpush1.bf16.msra.mxu0 %v173_v8  ;;  %v179_v15 = vpack.c.bf16 %v53_v13, %v51_v12  ;;  %v52_v17 = vld [vmem:[#allocation5 + $0x50] sm:$0xff]  ;;  %v41_v19 = vld [vmem:[#allocation2] sm:$0x3]  ;;  %v58_v22 = vsub.s32 0, %v57_v21  ;;  %v62_v24 = vsub.s32 1, %v57_v21  ;;  %p234_p2 = scmp.ne.s32.totalorder %s160_s12, %s233_s13  ;;  %p239_p4 = scmp.lt.s32.totalorder %s233_s13, %s233_s13 }
  0x2b   :  { %176 = vmatprep.subr.bf16.mxu0 %v175_v9  ;;  %v181_v18 = vpack.c.bf16 %v52_v17, %v50_v16  ;;  %v54_v23 = vld [vmem:[%s335_s2] sm:$0x3] }
  0x2c   :  { %v59_v25 = vrot.slane %v54_v23, %v58_v22  ;;  %v63_v26 = vrot.slane %v54_v23, %v62_v24  ;;  %p240_p5 = por %p239_p4, %p238_p3 }
  0x2e   :  { %178 = vmatpush1.bf16.msra.mxu0 %v177_v14  ;;  %p241_p6 = pnand %p240_p5, %p234_p2 }
  0x2f   :  { %180 = vmatprep.subr.bf16.mxu0 %v179_v15 }
  0x32   :  { %182 = vmatpush1.bf16.msra.mxu0 %v181_v18 }
  0x35   :  { %169 = vmatmul.mubr.msk.f32.vlgmr.msra.gmra.mrb[0].mxu0 %vm66_vm0, %v41_v19 }
 0x108   :  { %v136_v27 = vpop.f32.mrb[0].mxu0 }
 0x109   :  { %v137_v28 = vadd.f32 %v136_v27, %v59_v25  ;;  %v138_v29 = vpop.f32.mrb[1].mxu0 }
 0x10a   :  { %v139_v30 = vadd.f32 %v138_v29, %v63_v26 }
 0x10c   :  { %v143_v31 = vcombine.low %v137_v28, %v139_v30 }
 0x10e   :  { %170 = vst.sshfl [vmem:[#allocation7] sm:$0x33 pattern:$0x76325410] %v143_v31 }
 0x10f   :  { %244 = shalt.err (!%p241_p6)
}
 0x110   :  { %s245_s15 = scalar_lea.hbm %s336_s3, 64 }
 0x111   :  { %p246_p7 = scmp.ne.s32.totalorder %s336_s3, %s245_s15  ;;  %p249_p8 = scmp.lt.u32.totalorder %s245_s15, %s336_s3 }
 0x113   :  { %p251_p9 = pnand %p249_p8, %p246_p7 }
 0x115   :  { %254 = shalt.err (!%p251_p9)
}
 0x116   :  { %162 = dma.vmem_to_hbm [thread:$0]  %s160_s12, 64, %s336_s3, [#allocation4]  }
 0x117   :  { %259 = dma.done.wait [#allocation4], 64  }
 0x118   :  { %260 = vsyncadd [#allocation4], 4294967232 }
 0x119   :  { %166 = vsyncpa [#allocation3], 1 }
 0x11a   :  { %167 = vsyncpa [#allocation6], 1 }
 0x11b   :  { %168 = vsyncpa [#allocation4], 1 }

</bundles_post_ra>
